<compile_context>
chip_gen: v6e
topology: v6e:2x2x1
jax: 0.10.0
libtpu: 0.0.40
codegen_flags: <defaults>
</compile_context>

<pallas_src>
import math

import jax
import jax.numpy as jnp
from jax import lax
from jax.experimental import pallas as pl
from jax.experimental.pallas import tpu as pltpu


# Contract the LAST dim of both operands: a @ b.T without materializing a
# transpose -- the MXU consumes the transposed operand natively.
_CONTRACT_LAST = (((1,), (1,)), ((), ()))


def _linear_kernel(x_ref, w_ref, c_ref):
    """c = x @ W.T for one row-block.  x:(tr, D), w:(D, D), c:(tr, D)."""
    c = lax.dot_general(
        x_ref[...], w_ref[...], dimension_numbers=_CONTRACT_LAST,
        preferred_element_type=jnp.float32)
    c_ref[...] = c.astype(c_ref.dtype)


def _adj_tile_kernel(ci_ref, cj_ref, out_ref):
    """out = sigmoid(C_i @ C_j.T) for one (tm, tn) output tile."""
    logits = lax.dot_general(
        ci_ref[...], cj_ref[...], dimension_numbers=_CONTRACT_LAST,
        preferred_element_type=jnp.float32)
    # sigmoid(x) = 0.5*tanh(0.5*x) + 0.5: exact, a single EUP transcendental,
    # no exp overflow path and no approx-reciprocal error.
    out_ref[...] = (0.5 * jnp.tanh(0.5 * logits) + 0.5).astype(out_ref.dtype)


def _pick_adj_tile(n, d, c_itemsize, tile_n, vmem_budget_bytes):
    """Largest tile <= tile_n whose double-buffered working set fits VMEM."""
    if n <= tile_n:
        return n  # single full-array block (satisfies the (8,128) rule)
    tile = tile_n
    while tile > 128:
        # 2 output buffers (f32) + 2x double-buffered combine blocks (C_i, C_j)
        need = 2 * tile * tile * 4 + 2 * 2 * tile * d * c_itemsize
        if need <= vmem_budget_bytes:
            break
        tile //= 2
    return tile


def decoder_forward(node_embed, de_weight, *, tile_n=512, use_bf16_combine=True):
    """node_embed: (N, D), de_weight: (D, D)  ->  (N, N) sigmoid adjacency."""
    n, d = node_embed.shape
    assert de_weight.shape == (d, d)
    out_dtype = node_embed.dtype
    combine_dtype = jnp.bfloat16 if use_bf16_combine else jnp.float32

    # ---- Step 1: combine = X @ W.T, computed ONCE (N*D^2 flops), row-tiled.
    row_tile = n if n <= 512 else 512
    combine = pl.pallas_call(
        _linear_kernel,
        out_shape=jax.ShapeDtypeStruct((n, d), combine_dtype),
        grid=(pl.cdiv(n, row_tile),),
        in_specs=[
            pl.BlockSpec((row_tile, d), lambda i: (i, 0)),
            pl.BlockSpec((d, d), lambda i: (0, 0)),   # weight resident
        ],
        out_specs=pl.BlockSpec((row_tile, d), lambda i: (i, 0)),
        compiler_params=pltpu.CompilerParams(
            dimension_semantics=("parallel",),
            vmem_limit_bytes=64 * 1024 * 1024,
        ),
    )(node_embed, de_weight)

    # ---- Step 2: adj = sigmoid(C @ C.T), 2-D output-tiled, edge stores masked.
    tile = _pick_adj_tile(n, d, jnp.dtype(combine_dtype).itemsize, tile_n,
                          vmem_budget_bytes=40 * 1024 * 1024)
    grid = (pl.cdiv(n, tile), pl.cdiv(n, tile))
    out = pl.pallas_call(
        _adj_tile_kernel,
        out_shape=jax.ShapeDtypeStruct((n, n), out_dtype),
        grid=grid,
        in_specs=[
            pl.BlockSpec((tile, d), lambda i, j: (i, 0)),   # C rows -> out rows
            pl.BlockSpec((tile, d), lambda i, j: (j, 0)),   # C rows -> out cols
        ],
        out_specs=pl.BlockSpec((tile, tile), lambda i, j: (i, j)),
        compiler_params=pltpu.CompilerParams(
            # No reduction axis: both output-tile axes are independent, so both
            # can be sharded across TensorCores (v7x megacore).
            dimension_semantics=("parallel", "parallel"),
            vmem_limit_bytes=64 * 1024 * 1024,
        ),
    )(combine, combine)
    return out


def init_decoder_params(key, nembed):
    """Mirror Decoder.reset_parameters: uniform(-stdv, stdv), stdv = 1/sqrt(nembed)."""
    stdv = 1.0 / math.sqrt(nembed)
    return jax.random.uniform(
        key, (nembed, nembed), minval=-stdv, maxval=stdv, dtype=jnp.float32)


def _reference(node_embed, de_weight):
    combine = node_embed @ de_weight.T
    return jax.nn.sigmoid(combine @ combine.T)


if __name__ == "__main__":
    key = jax.random.PRNGKey(0)
    k1, k2, k3, k4 = jax.random.split(key, 4)

    # Case 1: tiny shapes consistent with the module (N=8 nodes, nembed=32),
    # exact f32 path (single full-array tile for both kernels).
    N1, D1 = 8, 32
    x1 = jax.random.normal(k1, (N1, D1), dtype=jnp.float32)
    w1 = init_decoder_params(k2, D1)
    out1 = jax.block_until_ready(decoder_forward(x1, w1, use_bf16_combine=False))
    ref1 = _reference(x1, w1)
    assert out1.shape == (N1, N1)
    assert jnp.allclose(out1, ref1, atol=1e-4, rtol=1e-4), "f32 single-tile mismatch"

    # Case 2: tiled path with masked edge blocks (N=320, tile 256 -> grid 2x2,
    # 320 is not a multiple of 256), full f32 precision.
    N2, D2 = 320, 64
    x2 = jax.random.normal(k3, (N2, D2), dtype=jnp.float32)
    w2 = init_decoder_params(k4, D2)
    out2 = jax.block_until_ready(
        decoder_forward(x2, w2, tile_n=256, use_bf16_combine=False))
    ref2 = _reference(x2, w2)
    assert out2.shape == (N2, N2)
    assert jnp.allclose(out2, ref2, atol=1e-4, rtol=1e-4), "f32 tiled mismatch"

    # Case 3: same shapes with the bf16-combine fast path for the dominant
    # matmul (documented, looser tolerance).
    out3 = jax.block_until_ready(
        decoder_forward(x2, w2, tile_n=256, use_bf16_combine=True))
    assert out3.shape == (N2, N2)
    assert jnp.allclose(out3, ref2, atol=5e-2, rtol=5e-2), "bf16 tiled mismatch"

    print("KERNEL_OK")
</pallas_src>

<mosaic_0001>
module attributes {stable_mosaic.version = 11 : i64} {
  func.func @_linear_kernel(%arg0: i32, %arg1: memref<8x32xf32, #tpu.memory_space<vmem>>, %arg2: memref<32x32xf32, #tpu.memory_space<vmem>>, %arg3: memref<8x32xf32, #tpu.memory_space<vmem>>) attributes {dimension_semantics = [#tpu.dimension_semantics<parallel>], iteration_bounds = array<i64: 1>, scalar_prefetch = 0 : i64, scratch_operands = 0 : i64, tpu.core_type = #tpu.core_type<tc>, window_params = [{transform_indices = @transform_0, window_bounds = array<i64: 8, 32>}, {pipeline_mode = #tpu.pipeline_mode<synchronous>, transform_indices = @transform_1, window_bounds = array<i64: 32, 32>}, {transform_indices = @transform_2, window_bounds = array<i64: 8, 32>}]} {
    %c0 = arith.constant 0 : index
    %c0_0 = arith.constant 0 : index
    %0 = vector.load %arg1[%c0, %c0_0] : memref<8x32xf32, #tpu.memory_space<vmem>>, vector<8x32xf32>
    %c0_1 = arith.constant 0 : index
    %c0_2 = arith.constant 0 : index
    %1 = vector.load %arg2[%c0_1, %c0_2] : memref<32x32xf32, #tpu.memory_space<vmem>>, vector<32x32xf32>
    %cst = arith.constant dense<0.000000e+00> : vector<8x32xf32>
    %2 = tpu.matmul %0, %1, %cst {dimension_numbers = #tpu.dot_dimension_numbers<[1], [1], [0], [0], [0, 0, 1, 0], [], []>} : vector<8x32xf32>, vector<32x32xf32>, vector<8x32xf32> -> vector<8x32xf32>
    %c0_3 = arith.constant 0 : index
    %c0_4 = arith.constant 0 : index
    %3 = vector.load %arg3[%c0_3, %c0_4] : memref<8x32xf32, #tpu.memory_space<vmem>>, vector<8x32xf32>
    tpu.vector_store %arg3[%c0_3, %c0_4], %2 {strides = array<i32>} : memref<8x32xf32, #tpu.memory_space<vmem>>, vector<8x32xf32>,
    return
  }
  func.func @transform_0(%arg0: i32) -> (i32, i32) {
    %c0_i32 = arith.constant 0 : i32
    %c0_i32_0 = arith.constant 0 : i32
    return %arg0, %c0_i32 : i32, i32
  }
  func.func @transform_1(%arg0: i32) -> (i32, i32) {
    %c0_i32 = arith.constant 0 : i32
    %c0_i32_0 = arith.constant 0 : i32
    %c0_i32_1 = arith.constant 0 : i32
    return %c0_i32, %c0_i32_0 : i32, i32
  }
  func.func @transform_2(%arg0: i32) -> (i32, i32) {
    %c0_i32 = arith.constant 0 : i32
    %c0_i32_0 = arith.constant 0 : i32
    return %arg0, %c0_i32 : i32, i32
  }
}

</mosaic_0001>

<bundles_post_ra>
// kernel: tpu_custom_call.1
= control target key start
LH: loop header
LB: loop body
LE: loop exit
PB: predicated region body
PF: predicated region fallthrough
CT: control target
= control target key end

     0   :  { %7 = vsyncpa [#allocation3], 0  ;;  %s277_s0 = inlined_call_operand.hbm [shape: f32[8,32], index: 0, kind: input, shape index: {}]   ;;  %s278_s1 = inlined_call_operand.hbm [shape: f32[32,32], index: 1, kind: input, shape index: {}]   ;;  %s279_s2 = inlined_call_operand.hbm [shape: f32[8,32], index: 2, kind: output, shape index: {}]  }
   0x1   :  { %8 = vsyncpa [#allocation6], 0 }
   0x2   :  { %9 = vsyncpa [#allocation4], 0  ;;  %s240_s9 = smov [#allocation2]   ;;  %s241_s11 = smov [#allocation5]  }
   0x3   :  { %s16_s10 = sshll.u32 %s240_s9, 4  ;;  %s25_s12 = sshll.u32 %s241_s11, 4  ;;  %s17_s10 = int_to_ptr.vmem [resolvable:$true] %s16_s10  ;;  %s26_s12 = int_to_ptr.vmem [resolvable:$true] %s25_s12 }
   0x4   :  { %s182_s13 = scalar_lea.vmem %s17_s10, 128  ;;  %p187_p1 = scmp.lt.s32.totalorder %s17_s10, %s17_s10 }
   0x5   :  { %p183_p0 = scmp.ne.s32.totalorder %s17_s10, %s182_s13  ;;  %p188_p2 = scmp.lt.s32.totalorder %s182_s13, %s182_s13 }
   0x7   :  { %p189_p3 = por %p188_p2, %p187_p1 }
   0x9   :  { %p190_p4 = pnand %p189_p3, %p183_p0 }
   0xb   :  { %193 = shalt.err (!%p190_p4)
}
   0xc   :  { %19 = dma.hbm_to_vmem [thread:$0]  %s277_s0, 128, %s17_s10, [#allocation3]  }
   0xd   :  { %s202_s16 = scalar_lea.vmem %s26_s12, 512  ;;  %p207_p6 = scmp.lt.s32.totalorder %s26_s12, %s26_s12 }
   0xe   :  { %p203_p5 = scmp.ne.s32.totalorder %s26_s12, %s202_s16  ;;  %p208_p7 = scmp.lt.s32.totalorder %s202_s16, %s202_s16 }
  0x10   :  { %p209_p8 = por %p208_p7, %p207_p6 }
  0x12   :  { %p210_p9 = pnand %p209_p8, %p203_p5 }
  0x14   :  { %213 = shalt.err (!%p210_p9)
}
  0x15   :  { %s242_s17 = smov 128   ;;  %s243_s18 = smov 8  }
  0x16   :  { %31 = dma.hbm_to_vmem [thread:$0]  %s278_s1, 512, %s26_s12, [#allocation6], %s242_s17, %s242_s17, %s243_s18  }
  0x17   :  { %234 = dma.done.wait [#allocation3], 128  }
  0x18   :  { %235 = vsyncadd [#allocation3], 4294967168 }
  0x19   :  { %236 = dma.done.wait [#allocation6], 512  }
  0x1a   :  { %237 = vsyncadd [#allocation6], 4294966784  ;;  %v244_v0 = vmov 0.0   ;;  %vm245_vm0 = vmmov 0   ;;  %vm43_vm1 = vcmask 261120   ;;  %v42_v1 = vld [vmem:[#allocation5 + $0x18] sm:$0xff] }
  0x1b   :  { %156 = vmatprep.subr.mxu0 %v244_v0  ;;  %164 = vmatprep.mubr.msk.f32.mxu0 %vm245_vm0, %v244_v0  ;;  %v41_v2 = vld [vmem:[#allocation5 + $0x10] sm:$0xff]  ;;  %v40_v3 = vld [vmem:[#allocation5 + $0x8] sm:$0xff]  ;;  %v39_v4 = vld [vmem:[#allocation5] sm:$0xff]  ;;  %s246_s0 = smov [#allocation7]  }
  0x1c   :  { %157 = vmatpush3.xpose.msk.msra.mxu0 %vm43_vm1, %v42_v1  ;;  %v38_v5 = vld [vmem:[#allocation2] sm:$0xff]  ;;  %s136_s1 = sshll.u32 %s246_s0, 4  ;;  %s137_s1 = int_to_ptr.vmem [resolvable:$true] %s136_s1 }
  0x1d   :  { %158 = vmatprep.subr.mxu0 %v244_v0  ;;  %s214_s21 = scalar_lea.vmem %s137_s1, 128  ;;  %p219_p11 = scmp.lt.s32.totalorder %s137_s1, %s137_s1 }
  0x1e   :  { %p215_p10 = scmp.ne.s32.totalorder %s137_s1, %s214_s21  ;;  %p220_p12 = scmp.lt.s32.totalorder %s214_s21, %s214_s21 }
  0x20   :  { %159 = vmatpush3.xpose.msk.msra.mxu0 %vm43_vm1, %v41_v2  ;;  %p221_p13 = por %p220_p12, %p219_p11 }
  0x21   :  { %160 = vmatprep.subr.mxu0 %v244_v0 }
  0x22   :  { %p222_p0 = pnand %p221_p13, %p215_p10 }
  0x24   :  { %161 = vmatpush3.xpose.msk.msra.mxu0 %vm43_vm1, %v40_v3 }
  0x25   :  { %162 = vmatprep.subr.mxu0 %v244_v0 }
  0x28   :  { %163 = vmatpush3.xpose.msk.msra.mxu0 %vm43_vm1, %v39_v4 }
  0x2b   :  { %165 = vmatmul.mubr.msk.f32.vlgmr.msra.gmra.mxu0 %vm43_vm1, %v38_v5 }
  0xeb   :  { %v125_v6 = vpop.f32.mrf.mxu0 }
  0xec   :  { %129 = vst.msk [vmem:[#allocation7] sm:$0xff] %vm43_vm1, %v125_v6 }
  0xed   :  { %v166_v7 = vpop.f32.mrf.mxu0 }
  0xee   :  { %225 = shalt.err (!%p222_p0)
}
  0xef   :  { %139 = dma.vmem_to_hbm [thread:$0]  %s137_s1, 128, %s279_s2, [#allocation4]  }
  0xf0   :  { %238 = dma.done.wait [#allocation4], 128  }
  0xf1   :  { %239 = vsyncadd [#allocation4], 4294967168 }
  0xf2   :  { %143 = vsyncpa [#allocation3], 1 }
  0xf3   :  { %144 = vsyncpa [#allocation6], 1 }
  0xf4   :  { %145 = vsyncpa [#allocation4], 1 }

</bundles_post_ra>
